<compile_context>
chip_gen: v6e
topology: v6e:2x2x1
jax: 0.10.0
libtpu: 0.0.40
codegen_flags: <defaults>
</compile_context>

<pallas_src>
import functools

import jax
import jax.numpy as jnp
from jax.experimental import pallas as pl
from jax.experimental.pallas import tpu as pltpu


LN_EPS = 1e-5


def _round_up(x: int, m: int) -> int:
    return ((x + m - 1) // m) * m


def feature_embedding_kernel(x_ref, w_ref, b_ref, gamma_ref, beta_ref, o_ref,
                             *, e_true: int, e_pad: int):
    """One batch tile: fused projection + bias/type-emb + LayerNorm.

    x_ref:     (TB, Dc+Dl+Ds)      compute dtype (bf16 or f32)
    w_ref:     (Dc+Dl+Ds, 3*Ep)    block-diagonal fused weight (same dtype)
    b_ref:     (1, 3*Ep)           f32 bias + type-embedding per branch
    gamma_ref: (1, Ep)             f32
    beta_ref:  (1, Ep)             f32
    o_ref:     (TB, 3*Ep)          f32 lane-dense output
    """
    # Single MXU pass for all three branches; f32 accumulation.
    proj = jnp.dot(x_ref[...], w_ref[...],
                   preferred_element_type=jnp.float32) + b_ref[...]

    gamma = gamma_ref[...]          # hoisted once per grid step
    beta = beta_ref[...]
    inv_e = 1.0 / e_true
    pad_lanes = float(e_pad - e_true)

    for k in range(3):  # unrolled at trace time; 128-aligned static slices
        seg = proj[:, k * e_pad:(k + 1) * e_pad]            # (TB, Ep)
        # Padded lanes of `seg` are exactly zero, so the sum over Ep lanes
        # equals the sum over the true E lanes.
        mu = jnp.sum(seg, axis=-1, keepdims=True) * inv_e
        d = seg - mu
        # Two-pass variance; padded lanes contribute (0 - mu)^2 = mu^2 each,
        # remove that exactly instead of relying on E[x^2]-E[x]^2.
        ssd = jnp.sum(d * d, axis=-1, keepdims=True) - pad_lanes * (mu * mu)
        var = jnp.maximum(ssd * inv_e, 0.0)
        y = d * jax.lax.rsqrt(var + LN_EPS) * gamma + beta
        o_ref[:, k * e_pad:(k + 1) * e_pad] = y.astype(o_ref.dtype)


def prefuse_params(params, *, compute_dtype=jnp.bfloat16):
    """Build the fused kernel operands ONCE (call at init, reuse per forward)."""
    f32 = jnp.float32
    E = params["wc"].shape[1]
    Ep = _round_up(E, 128)
    Dc = params["wc"].shape[0]
    Dl = params["wl"].shape[0]
    Ds = params["ws"].shape[0]

    def pad_e(a):  # pad last dim E -> Ep with zeros
        a = a.astype(f32)
        return jnp.pad(a, [(0, 0)] * (a.ndim - 1) + [(0, Ep - E)])

    zc = jnp.zeros((Dc, Ep), f32)
    zl = jnp.zeros((Dl, Ep), f32)
    zs = jnp.zeros((Ds, Ep), f32)
    w_fused = jnp.concatenate([
        jnp.concatenate([pad_e(params["wc"]), zc, zc], axis=1),
        jnp.concatenate([zl, pad_e(params["wl"]), zl], axis=1),
        jnp.concatenate([zs, zs, pad_e(params["ws"])], axis=1),
    ], axis=0).astype(compute_dtype)                     # (D_total, 3*Ep)

    te = params["type_emb"].astype(f32)
    b_fused = jnp.concatenate([
        pad_e(params["bc"] + te[0]),
        pad_e(params["bl"] + te[1]),
        pad_e(params["bs"] + te[2]),
    ], axis=0).reshape(1, 3 * Ep)                        # f32

    gamma_p = pad_e(params["ln_gamma"]).reshape(1, Ep)
    beta_p = pad_e(params["ln_beta"]).reshape(1, Ep)

    return {
        "w": w_fused, "b": b_fused, "gamma": gamma_p, "beta": beta_p,
        "dims": (Dc, Dl, Ds), "E": E, "Ep": Ep,
        "compute_dtype": compute_dtype,
    }


def _vmem_capacity_bytes() -> int:
    try:
        cap = int(getattr(pltpu.get_tpu_info(), "vmem_capacity_bytes"))
        if cap > 0:
            return cap
    except Exception:
        pass
    return 64 * 1024 * 1024  # v7x per-TC size; conservative on v5e/v6e


def _vmem_need_bytes(tb: int, d_total: int, ep: int,
                     in_bytes: int, w_bytes: int) -> int:
    x_tile = tb * d_total * in_bytes          # input tile (compute dtype)
    o_tile = tb * 3 * ep * 4                  # f32 output tile
    w = d_total * 3 * ep * w_bytes            # resident fused weight
    vecs = 5 * ep * 4                         # bias(3*Ep) + gamma + beta
    proj = tb * 3 * ep * 4                    # in-kernel f32 temp
    # tiled operands double-buffered; invariants conservatively counted 2x too
    return 2 * x_tile + 2 * o_tile + 2 * (w + vecs) + proj


def feature_embedding(cnn_x, lstm_x, static_x, fused, *,
                      tb_target: int | None = None, unpad: bool = True):
    """Forward pass matching PyTorch FeatureEmbedding (eval mode).

    cnn_x:    (B, Dc)   lstm_x: (B, Dl)   static_x: (B, Ds)
    fused:    output of prefuse_params()
    returns:  (B, 3, E) float32   (or (Bp, 3, Ep) padded view if unpad=False)
    """
    B = cnn_x.shape[0]
    Dc, Dl, Ds = fused["dims"]
    E, Ep = fused["E"], fused["Ep"]
    cdt = fused["compute_dtype"]
    D_total = Dc + Dl + Ds
    in_bytes = jnp.dtype(cdt).itemsize
    w_bytes = jnp.dtype(fused["w"].dtype).itemsize

    cap = _vmem_capacity_bytes()
    budget = int(cap * 0.75)

    # Pick the largest batch tile whose double-buffered footprint fits VMEM.
    if tb_target is None:
        tb_target = 1024
        while (tb_target > 64 and
               _vmem_need_bytes(tb_target, D_total, Ep, in_bytes, w_bytes) > budget):
            tb_target //= 2

    # Batch tiling: multiples of 16 (bf16 sublane packing); always emit >= 2
    # grid steps so both v7x TensorCores get work ("parallel" axis).
    B16 = _round_up(B, 16)
    if B16 <= tb_target:
        TB = max(16, _round_up(pl.cdiv(B16, 2), 16))
        Bp = max(_round_up(B, TB), 2 * TB)
    else:
        TB = tb_target
        Bp = _round_up(B, TB)
    grid = (Bp // TB,)

    # Per-call work is only the activation concat (+ batch pad when needed).
    x_cat = jnp.concatenate(
        [cnn_x.astype(cdt), lstm_x.astype(cdt), static_x.astype(cdt)], axis=1)
    if Bp != B:
        x_cat = jnp.pad(x_cat, ((0, Bp - B), (0, 0)))

    need = _vmem_need_bytes(TB, D_total, Ep, in_bytes, w_bytes)
    vmem_limit = int(min(max(1.5 * need + (2 << 20), 16 << 20), cap))

    kernel = functools.partial(feature_embedding_kernel, e_true=E, e_pad=Ep)

    out = pl.pallas_call(
        kernel,
        out_shape=jax.ShapeDtypeStruct((Bp, 3 * Ep), jnp.float32),
        grid_spec=pltpu.PrefetchScalarGridSpec(
            num_scalar_prefetch=0,
            grid=grid,
            in_specs=[
                pl.BlockSpec((TB, D_total), lambda i: (i, 0)),      # x (tiled)
                pl.BlockSpec((D_total, 3 * Ep), lambda i: (0, 0)),  # W (resident)
                pl.BlockSpec((1, 3 * Ep), lambda i: (0, 0)),        # bias+type-emb
                pl.BlockSpec((1, Ep), lambda i: (0, 0)),            # gamma
                pl.BlockSpec((1, Ep), lambda i: (0, 0)),            # beta
            ],
            out_specs=pl.BlockSpec((TB, 3 * Ep), lambda i: (i, 0)),
        ),
        compiler_params=pltpu.CompilerParams(
            dimension_semantics=("parallel",),
            vmem_limit_bytes=vmem_limit,
        ),
    )(x_cat, fused["w"], fused["b"], fused["gamma"], fused["beta"])

    # Free metadata reshape (row-major split of the last dim).
    out = out.reshape(Bp, 3, Ep)
    if unpad:
        # Only a real copy when E % 128 != 0 or B != Bp; padded rows (>= B)
        # hold `beta` and padded lanes hold 0, so unpad=False is safe for
        # consumers that ignore them.
        out = out[:B, :, :E]
    return out


def init_params(key, cnn_dim, lstm_dim, static_dim, embed_dim):
    """Deterministic synthetic parameters (PyTorch-like init shapes)."""
    ks = jax.random.split(key, 7)

    def linear(kw, kb, fan_in):
        bound = 1.0 / jnp.sqrt(fan_in)
        w = jax.random.uniform(kw, (fan_in, embed_dim), jnp.float32, -bound, bound)
        b = jax.random.uniform(kb, (embed_dim,), jnp.float32, -bound, bound)
        return w, b

    wc, bc = linear(ks[0], ks[1], cnn_dim)
    wl, bl = linear(ks[2], ks[3], lstm_dim)
    ws, bs = linear(ks[4], ks[5], static_dim)
    type_emb = jax.random.normal(ks[6], (3, embed_dim), jnp.float32)
    return {
        "wc": wc, "bc": bc,
        "wl": wl, "bl": bl,
        "ws": ws, "bs": bs,
        "type_emb": type_emb,
        "ln_gamma": jnp.ones((embed_dim,), jnp.float32),
        "ln_beta": jnp.zeros((embed_dim,), jnp.float32),
    }


def reference(cnn_x, lstm_x, static_x, params):
    """Pure-JAX reference matching the PyTorch forward (eval mode)."""
    cnn_e = cnn_x @ params["wc"] + params["bc"]
    lstm_e = lstm_x @ params["wl"] + params["bl"]
    stat_e = static_x @ params["ws"] + params["bs"]
    feats = jnp.stack([cnn_e, lstm_e, stat_e], axis=1)          # (B, 3, E)
    feats = feats + params["type_emb"][None, :, :]
    mu = jnp.mean(feats, axis=-1, keepdims=True)
    var = jnp.mean((feats - mu) ** 2, axis=-1, keepdims=True)
    return (feats - mu) * jax.lax.rsqrt(var + LN_EPS) * params["ln_gamma"] + params["ln_beta"]


if __name__ == "__main__":
    B = 2
    CNN_DIM, LSTM_DIM, STATIC_DIM, EMBED_DIM = 16, 12, 8, 32

    key = jax.random.PRNGKey(0)
    k_in, k_p = jax.random.split(key)
    k1, k2, k3 = jax.random.split(k_in, 3)

    cnn_x = jax.random.normal(k1, (B, CNN_DIM), jnp.float32)
    lstm_x = jax.random.normal(k2, (B, LSTM_DIM), jnp.float32)
    static_x = jax.random.normal(k3, (B, STATIC_DIM), jnp.float32)

    params = init_params(k_p, CNN_DIM, LSTM_DIM, STATIC_DIM, EMBED_DIM)
    ref = reference(cnn_x, lstm_x, static_x, params)

    # Exact-numerics path (f32 matmul inputs): tight tolerance vs reference.
    fused_f32 = prefuse_params(params, compute_dtype=jnp.float32)
    out_f32 = jax.block_until_ready(
        feature_embedding(cnn_x, lstm_x, static_x, fused_f32))
    assert out_f32.shape == (B, 3, EMBED_DIM)
    assert jnp.allclose(out_f32, ref, atol=1e-4, rtol=1e-4), "f32 mismatch"

    # Default fast path (bf16 matmul inputs, f32 accumulation + LayerNorm).
    fused_bf16 = prefuse_params(params)  # compute_dtype=jnp.bfloat16
    out_bf16 = jax.block_until_ready(
        feature_embedding(cnn_x, lstm_x, static_x, fused_bf16))
    assert out_bf16.shape == (B, 3, EMBED_DIM)
    assert jnp.allclose(out_bf16, ref, atol=3e-2, rtol=3e-2), "bf16 mismatch"

    print("KERNEL_OK")
</pallas_src>

<mosaic_0001>
module attributes {stable_mosaic.version = 11 : i64} {
  func.func @feature_embedding_kernel(%arg0: i32, %arg1: memref<16x36xf32, #tpu.memory_space<vmem>>, %arg2: memref<36x384xf32, #tpu.memory_space<vmem>>, %arg3: memref<1x384xf32, #tpu.memory_space<vmem>>, %arg4: memref<1x128xf32, #tpu.memory_space<vmem>>, %arg5: memref<1x128xf32, #tpu.memory_space<vmem>>, %arg6: memref<16x384xf32, #tpu.memory_space<vmem>>) attributes {dimension_semantics = [#tpu.dimension_semantics<parallel>], iteration_bounds = array<i64: 2>, scalar_prefetch = 0 : i64, scratch_operands = 0 : i64, tpu.core_type = #tpu.core_type<tc>, window_params = [{transform_indices = @transform_0, window_bounds = array<i64: 16, 36>}, {pipeline_mode = #tpu.pipeline_mode<synchronous>, transform_indices = @transform_1, window_bounds = array<i64: 36, 384>}, {pipeline_mode = #tpu.pipeline_mode<synchronous>, transform_indices = @transform_2, window_bounds = array<i64: 1, 384>}, {pipeline_mode = #tpu.pipeline_mode<synchronous>, transform_indices = @transform_3, window_bounds = array<i64: 1, 128>}, {pipeline_mode = #tpu.pipeline_mode<synchronous>, transform_indices = @transform_4, window_bounds = array<i64: 1, 128>}, {transform_indices = @transform_5, window_bounds = array<i64: 16, 384>}]} {
    %c0 = arith.constant 0 : index
    %c0_0 = arith.constant 0 : index
    %0 = vector.load %arg1[%c0, %c0_0] : memref<16x36xf32, #tpu.memory_space<vmem>>, vector<16x36xf32>
    %c0_1 = arith.constant 0 : index
    %c0_2 = arith.constant 0 : index
    %1 = vector.load %arg2[%c0_1, %c0_2] : memref<36x384xf32, #tpu.memory_space<vmem>>, vector<36x384xf32>
    %cst = arith.constant dense<0.000000e+00> : vector<16x384xf32>
    %2 = tpu.matmul %0, %1, %cst {dimension_numbers = #tpu.dot_dimension_numbers<[1], [0], [0], [1], [0, 0, 1, 1], [], []>} : vector<16x36xf32>, vector<36x384xf32>, vector<16x384xf32> -> vector<16x384xf32>
    %c0_3 = arith.constant 0 : index
    %c0_4 = arith.constant 0 : index
    %3 = vector.load %arg3[%c0_3, %c0_4] : memref<1x384xf32, #tpu.memory_space<vmem>>, vector<1x384xf32>
    %4 = vector.broadcast %3 : vector<1x384xf32> to vector<16x384xf32>
    %5 = arith.addf %2, %4 : vector<16x384xf32>
    %c0_5 = arith.constant 0 : index
    %c0_6 = arith.constant 0 : index
    %6 = vector.load %arg4[%c0_5, %c0_6] : memref<1x128xf32, #tpu.memory_space<vmem>>, vector<1x128xf32>
    %c0_7 = arith.constant 0 : index
    %c0_8 = arith.constant 0 : index
    %7 = vector.load %arg5[%c0_7, %c0_8] : memref<1x128xf32, #tpu.memory_space<vmem>>, vector<1x128xf32>
    %8 = vector.extract_strided_slice %5 {offsets = [0, 0], sizes = [16, 128], strides = [1, 1]} : vector<16x384xf32> to vector<16x128xf32>
    %cst_9 = arith.constant dense<0.000000e+00> : vector<16xf32>
    %9 = vector.multi_reduction <add>, %8, %cst_9 [1] : vector<16x128xf32> to vector<16xf32>
    %10 = vector.shape_cast %9 : vector<16xf32> to vector<16x1xf32>
    %cst_10 = arith.constant 3.125000e-02 : f32
    %11 = vector.broadcast %cst_10 : f32 to vector<16x1xf32>
    %12 = arith.mulf %10, %11 : vector<16x1xf32>
    %13 = vector.broadcast %12 : vector<16x1xf32> to vector<16x128xf32>
    %14 = arith.subf %8, %13 : vector<16x128xf32>
    %15 = arith.mulf %14, %14 : vector<16x128xf32>
    %cst_11 = arith.constant dense<0.000000e+00> : vector<16xf32>
    %16 = vector.multi_reduction <add>, %15, %cst_11 [1] : vector<16x128xf32> to vector<16xf32>
    %17 = vector.shape_cast %16 : vector<16xf32> to vector<16x1xf32>
    %18 = arith.mulf %12, %12 : vector<16x1xf32>
    %cst_12 = arith.constant 9.600000e+01 : f32
    %19 = vector.broadcast %cst_12 : f32 to vector<16x1xf32>
    %20 = arith.mulf %19, %18 : vector<16x1xf32>
    %21 = arith.subf %17, %20 : vector<16x1xf32>
    %cst_13 = arith.constant 3.125000e-02 : f32
    %22 = vector.broadcast %cst_13 : f32 to vector<16x1xf32>
    %23 = arith.mulf %21, %22 : vector<16x1xf32>
    %cst_14 = arith.constant 0.000000e+00 : f32
    %24 = vector.broadcast %cst_14 : f32 to vector<16x1xf32>
    %25 = arith.maximumf %23, %24 : vector<16x1xf32>
    %cst_15 = arith.constant 9.99999974E-6 : f32
    %26 = vector.broadcast %cst_15 : f32 to vector<16x1xf32>
    %27 = arith.addf %25, %26 : vector<16x1xf32>
    %28 = math.rsqrt %27 : vector<16x1xf32>
    %29 = vector.broadcast %28 : vector<16x1xf32> to vector<16x128xf32>
    %30 = arith.mulf %14, %29 : vector<16x128xf32>
    %31 = vector.broadcast %6 : vector<1x128xf32> to vector<16x128xf32>
    %32 = arith.mulf %30, %31 : vector<16x128xf32>
    %33 = vector.broadcast %7 : vector<1x128xf32> to vector<16x128xf32>
    %34 = arith.addf %32, %33 : vector<16x128xf32>
    %c0_16 = arith.constant 0 : index
    %c0_17 = arith.constant 0 : index
    %35 = vector.load %arg6[%c0_16, %c0_17] : memref<16x384xf32, #tpu.memory_space<vmem>>, vector<16x128xf32>
    tpu.vector_store %arg6[%c0_16, %c0_17], %34 {strides = array<i32>} : memref<16x384xf32, #tpu.memory_space<vmem>>, vector<16x128xf32>,
    %36 = vector.extract_strided_slice %5 {offsets = [0, 128], sizes = [16, 128], strides = [1, 1]} : vector<16x384xf32> to vector<16x128xf32>
    %cst_18 = arith.constant dense<0.000000e+00> : vector<16xf32>
    %37 = vector.multi_reduction <add>, %36, %cst_18 [1] : vector<16x128xf32> to vector<16xf32>
    %38 = vector.shape_cast %37 : vector<16xf32> to vector<16x1xf32>
    %cst_19 = arith.constant 3.125000e-02 : f32
    %39 = vector.broadcast %cst_19 : f32 to vector<16x1xf32>
    %40 = arith.mulf %38, %39 : vector<16x1xf32>
    %41 = vector.broadcast %40 : vector<16x1xf32> to vector<16x128xf32>
    %42 = arith.subf %36, %41 : vector<16x128xf32>
    %43 = arith.mulf %42, %42 : vector<16x128xf32>
    %cst_20 = arith.constant dense<0.000000e+00> : vector<16xf32>
    %44 = vector.multi_reduction <add>, %43, %cst_20 [1] : vector<16x128xf32> to vector<16xf32>
    %45 = vector.shape_cast %44 : vector<16xf32> to vector<16x1xf32>
    %46 = arith.mulf %40, %40 : vector<16x1xf32>
    %cst_21 = arith.constant 9.600000e+01 : f32
    %47 = vector.broadcast %cst_21 : f32 to vector<16x1xf32>
    %48 = arith.mulf %47, %46 : vector<16x1xf32>
    %49 = arith.subf %45, %48 : vector<16x1xf32>
    %cst_22 = arith.constant 3.125000e-02 : f32
    %50 = vector.broadcast %cst_22 : f32 to vector<16x1xf32>
    %51 = arith.mulf %49, %50 : vector<16x1xf32>
    %cst_23 = arith.constant 0.000000e+00 : f32
    %52 = vector.broadcast %cst_23 : f32 to vector<16x1xf32>
    %53 = arith.maximumf %51, %52 : vector<16x1xf32>
    %cst_24 = arith.constant 9.99999974E-6 : f32
    %54 = vector.broadcast %cst_24 : f32 to vector<16x1xf32>
    %55 = arith.addf %53, %54 : vector<16x1xf32>
    %56 = math.rsqrt %55 : vector<16x1xf32>
    %57 = vector.broadcast %56 : vector<16x1xf32> to vector<16x128xf32>
    %58 = arith.mulf %42, %57 : vector<16x128xf32>
    %59 = vector.broadcast %6 : vector<1x128xf32> to vector<16x128xf32>
    %60 = arith.mulf %58, %59 : vector<16x128xf32>
    %61 = vector.broadcast %7 : vector<1x128xf32> to vector<16x128xf32>
    %62 = arith.addf %60, %61 : vector<16x128xf32>
    %c0_25 = arith.constant 0 : index
    %c128 = arith.constant 128 : index
    %63 = vector.load %arg6[%c0_25, %c128] : memref<16x384xf32, #tpu.memory_space<vmem>>, vector<16x128xf32>
    tpu.vector_store %arg6[%c0_25, %c128], %62 {strides = array<i32>} : memref<16x384xf32, #tpu.memory_space<vmem>>, vector<16x128xf32>,
    %64 = vector.extract_strided_slice %5 {offsets = [0, 256], sizes = [16, 128], strides = [1, 1]} : vector<16x384xf32> to vector<16x128xf32>
    %cst_26 = arith.constant dense<0.000000e+00> : vector<16xf32>
    %65 = vector.multi_reduction <add>, %64, %cst_26 [1] : vector<16x128xf32> to vector<16xf32>
    %66 = vector.shape_cast %65 : vector<16xf32> to vector<16x1xf32>
    %cst_27 = arith.constant 3.125000e-02 : f32
    %67 = vector.broadcast %cst_27 : f32 to vector<16x1xf32>
    %68 = arith.mulf %66, %67 : vector<16x1xf32>
    %69 = vector.broadcast %68 : vector<16x1xf32> to vector<16x128xf32>
    %70 = arith.subf %64, %69 : vector<16x128xf32>
    %71 = arith.mulf %70, %70 : vector<16x128xf32>
    %cst_28 = arith.constant dense<0.000000e+00> : vector<16xf32>
    %72 = vector.multi_reduction <add>, %71, %cst_28 [1] : vector<16x128xf32> to vector<16xf32>
    %73 = vector.shape_cast %72 : vector<16xf32> to vector<16x1xf32>
    %74 = arith.mulf %68, %68 : vector<16x1xf32>
    %cst_29 = arith.constant 9.600000e+01 : f32
    %75 = vector.broadcast %cst_29 : f32 to vector<16x1xf32>
    %76 = arith.mulf %75, %74 : vector<16x1xf32>
    %77 = arith.subf %73, %76 : vector<16x1xf32>
    %cst_30 = arith.constant 3.125000e-02 : f32
    %78 = vector.broadcast %cst_30 : f32 to vector<16x1xf32>
    %79 = arith.mulf %77, %78 : vector<16x1xf32>
    %cst_31 = arith.constant 0.000000e+00 : f32
    %80 = vector.broadcast %cst_31 : f32 to vector<16x1xf32>
    %81 = arith.maximumf %79, %80 : vector<16x1xf32>
    %cst_32 = arith.constant 9.99999974E-6 : f32
    %82 = vector.broadcast %cst_32 : f32 to vector<16x1xf32>
    %83 = arith.addf %81, %82 : vector<16x1xf32>
    %84 = math.rsqrt %83 : vector<16x1xf32>
    %85 = vector.broadcast %84 : vector<16x1xf32> to vector<16x128xf32>
    %86 = arith.mulf %70, %85 : vector<16x128xf32>
    %87 = vector.broadcast %6 : vector<1x128xf32> to vector<16x128xf32>
    %88 = arith.mulf %86, %87 : vector<16x128xf32>
    %89 = vector.broadcast %7 : vector<1x128xf32> to vector<16x128xf32>
    %90 = arith.addf %88, %89 : vector<16x128xf32>
    %c0_33 = arith.constant 0 : index
    %c256 = arith.constant 256 : index
    %91 = vector.load %arg6[%c0_33, %c256] : memref<16x384xf32, #tpu.memory_space<vmem>>, vector<16x128xf32>
    tpu.vector_store %arg6[%c0_33, %c256], %90 {strides = array<i32>} : memref<16x384xf32, #tpu.memory_space<vmem>>, vector<16x128xf32>,
    return
  }
  func.func @transform_0(%arg0: i32) -> (i32, i32) {
    %c0_i32 = arith.constant 0 : i32
    %c0_i32_0 = arith.constant 0 : i32
    return %arg0, %c0_i32 : i32, i32
  }
  func.func @transform_1(%arg0: i32) -> (i32, i32) {
    %c0_i32 = arith.constant 0 : i32
    %c0_i32_0 = arith.constant 0 : i32
    %c0_i32_1 = arith.constant 0 : i32
    return %c0_i32, %c0_i32_0 : i32, i32
  }
  func.func @transform_2(%arg0: i32) -> (i32, i32) {
    %c0_i32 = arith.constant 0 : i32
    %c0_i32_0 = arith.constant 0 : i32
    %c0_i32_1 = arith.constant 0 : i32
    return %c0_i32, %c0_i32_0 : i32, i32
  }
  func.func @transform_3(%arg0: i32) -> (i32, i32) {
    %c0_i32 = arith.constant 0 : i32
    %c0_i32_0 = arith.constant 0 : i32
    %c0_i32_1 = arith.constant 0 : i32
    return %c0_i32, %c0_i32_0 : i32, i32
  }
  func.func @transform_4(%arg0: i32) -> (i32, i32) {
    %c0_i32 = arith.constant 0 : i32
    %c0_i32_0 = arith.constant 0 : i32
    %c0_i32_1 = arith.constant 0 : i32
    return %c0_i32, %c0_i32_0 : i32, i32
  }
  func.func @transform_5(%arg0: i32) -> (i32, i32) {
    %c0_i32 = arith.constant 0 : i32
    %c0_i32_0 = arith.constant 0 : i32
    return %arg0, %c0_i32 : i32, i32
  }
}

</mosaic_0001>

<bundles_post_ra>
// kernel: tpu_custom_call.1
= control target key start
LH: loop header
LB: loop body
LE: loop exit
PB: predicated region body
PF: predicated region fallthrough
CT: control target
= control target key end

     0   :  { %10 = vsyncpa [#allocation3], 0  ;;  %s1191_s0 = inlined_call_operand.hbm [shape: f32[32,36], index: 0, kind: input, shape index: {}]   ;;  %s1192_s1 = inlined_call_operand.hbm [shape: f32[36,384], index: 1, kind: input, shape index: {}]   ;;  %s1193_s2 = inlined_call_operand.vmem [shape: f32[1,384], index: 2, kind: input, shape index: {}]   ;;  %s1194_s3 = inlined_call_operand.vmem [shape: f32[1,128], index: 3, kind: input, shape index: {}]   ;;  %s1195_s4 = inlined_call_operand.vmem [shape: f32[1,128], index: 4, kind: input, shape index: {}]   ;;  %s1196_s5 = inlined_call_operand.hbm [shape: f32[32,384], index: 5, kind: output, shape index: {}]  }
   0x1   :  { %12 = vsyncpa [#allocation3 + $0x1], 0 }
   0x2   :  { %13 = vsyncpa [#allocation6], 0 }
   0x3   :  { %14 = vsyncpa [#allocation4], 0 }
   0x4   :  { %16 = vsyncpa [#allocation4 + $0x1], 0  ;;  %s970_s18 = smov 0   ;;  %s972_s19 = smov 0  }
   0x5   :  { %s974_s20 = smov 0   ;;  %s976_s21 = smov 0  }
   0x6 LB: > { %s991_s22 = sadd.s32 4294967295, %s928_s21   ;;  %s683_s23 = sadd.s32 4294967294, %s928_s21   ;;  %s928_s21 = sphi %s976_s21, %s1218_s21   ;;  %s924_s20 = sphi %s974_s20, %s1217_s20   ;;  %s920_s19 = sphi %s972_s19, %s1216_s19   ;;  %s916_s18 = sphi %s970_s18, %s1215_s18  }
   0x7   : > { %p42_p0 = scmp.ne.s32.totalorder %s920_s19, %s916_s18  ;;  %p1197_p1 = scmp.eq.s32.totalorder %s991_s22, 0 }
   0x8   : > { %p156_p3 = scmp.eq.s32.totalorder %s683_s23, 1  ;;  %p684_p5 = scmp.ge.s32.totalorder %s928_s21, 1 }
   0x9   : > { %p1000_p4 = por %p1197_p1, %p42_p0  ;;  %p163_p7 = scmp.lt.s32.totalorder %s928_s21, 3 }
   0xa   : > { %p1005_p6 = por %p156_p3, %p42_p0  ;;  %s930_s27 = smov [#allocation5]  }
   0xb   : > { %s1201_s24 = scalar_select %p1000_p4, 1, 0 }
   0xc   : > { %s1202_s25 = scalar_select %p1005_p6, 1, 0 }
   0xd   : > { %p1010_p8 = pnand %p684_p5, %p163_p7  ;;  %s175_s28 = sshll.u32 %s930_s27, 4  ;;  %s176_s28 = int_to_ptr.vmem [resolvable:$true] %s175_s28 }
   0xe   : > { %s1024_s30 = sadd.s32 1, %s928_s21   ;;  %s29_s6 = sadd.s32 1, %s924_s20 }
   0xf   : > { %s1203_s26 = scalar_select %p1010_p8, 1, 0 }
  0x10   : > { %p738_p9 = pneg %p1010_p8  ;;  %s26_s7 = ssub.s32 %s928_s21, %s1024_s30 }
  0x11   : > { %s817_s8 = scalar_lea.vmem %s176_s28, 1920  ;;  %p825_p5 = scmp.lt.s32.totalorder %s176_s28, %s176_s28 }
  0x12   : > { %p1019_p11 = pnand %p738_p9, %p1197_p1  ;;  %p818_p13 = scmp.ne.s32.totalorder %s176_s28, %s817_s8 }
  0x13   : > { %p826_p7 = scmp.lt.s32.totalorder %s817_s8, %s817_s8 }
  0x14   : > { %p808_p12 = pneg %p1019_p11 }
  0x15   : > { %p827_p10 = por %p826_p7, %p825_p5 }
  0x16   : > { %p820_p0 = pnand %p818_p13, %p808_p12 }
  0x18   : > { %p821_p3 = pneg %p820_p0 }
  0x1a   : > { %p828_p2 = pnand %p827_p10, %p821_p3 }
  0x1c   : > { %831 = shalt.err (!%p828_p2)
}
  0x1d   : > { %s931_s9 = smov 384   ;;  %s932_s10 = smov 24  }
  0x1e   : > { %741 = dma.hbm_to_vmem [thread:$0]  (!%p1019_p11), %s1192_s1, 1920, %s176_s28, [#allocation6], %s931_s9, %s931_s9, %s932_s10  }
  0x1f   : > { %p27_p9 = scmp.eq.s32.totalorder %s26_s7, 0  ;;  %p36_p12 = scmp.ne.s32.totalorder %s924_s20, %s920_s19 }
  0x20   : > { %p37_p10 = scmp.eq.s32.totalorder %s928_s21, 0  ;;  %p751_p2 = scmp.lt.s32.totalorder %s928_s21, 2 }
  0x21   : > { %s1041_s13 = scalar_select %p27_p9, %s924_s20, %s29_s6  }
  0x22   : > { %p38_p13 = por %p37_p10, %p36_p12  ;;  %p1205_p0 = scmp.eq.s32.totalorder %s991_s22, 1 }
  0x23   : > { %s198_s15 = sand.u32 1, %s924_s20   ;;  %s707_s16 = sshll.u32 %s928_s21, 8 }
  0x24   : > { %p1045_p3 = por %p1205_p0, %p36_p12  ;;  %s687_s17 = sshll.u32 %s198_s15, 4 }
  0x25   : > { %s1054_s29 = scalar_lea.hbm %s1191_s0, %s707_s16  ;;  %s202_s28 = scalar_lea.vmem [#allocation2], %s687_s17 }
  0x26   : > { %s1206_s14 = scalar_select %p1045_p3, 1, 0 }
  0x27   : > { %s209_s6 = sshll.u32 %s202_s28, 4  ;;  %p1056_p11 = pnand %p751_p2, %p38_p13  ;;  %s1060_s6 = int_to_ptr.vmem [resolvable:$true] %s209_s6 }
  0x28   : > { %s1062_s8 = scalar_lea.sflag [#allocation3], %s198_s15  ;;  %s832_s9 = scalar_lea.hbm %s1054_s29, 256 }
  0x29   : > { %p833_p5 = scmp.ne.s32.totalorder %s1054_s29, %s832_s9  ;;  %p834_p7 = pneg %p1056_p11 }
  0x2a   : > { %s837_s12 = scalar_lea.hbm %s1191_s0, 512  ;;  %p838_p10 = scmp.lt.s32.totalorder %s1054_s29, %s1191_s0 }
  0x2b   : > { %p835_p9 = pnand %p834_p7, %p833_p5  ;;  %p839_p2 = scmp.lt.s32.totalorder %s837_s12, %s832_s9 }
  0x2d   : > { %p836_p12 = pneg %p835_p9  ;;  %p840_p13 = por %p839_p2, %p838_p10 }
  0x2f   : > { %p841_p0 = pnand %p840_p13, %p836_p12 }
  0x31   : > { %844 = shalt.err (!%p841_p0)
}
  0x32   : > { %s845_s15 = scalar_lea.vmem %s1060_s6, 256  ;;  %s933_s23 = smov [#allocation2]  }
  0x33   : > { %p846_p1 = scmp.ne.s32.totalorder %s1060_s6, %s845_s15  ;;  %s850_s27 = sshll.u32 %s933_s23, 4  ;;  %s851_s27 = int_to_ptr.vmem [resolvable:$false] %s850_s27 }
  0x34   : > { %s852_s28 = scalar_lea.vmem %s851_s27, 512  ;;  %p853_p9 = scmp.lt.s32.totalorder %s1060_s6, %s851_s27 }
  0x35   : > { %p848_p6 = pnand %p846_p1, %p834_p7  ;;  %p854_p3 = scmp.lt.s32.totalorder %s852_s28, %s845_s15 }
  0x37   : > { %p849_p5 = pneg %p848_p6  ;;  %p855_p4 = por %p854_p3, %p853_p9 }
  0x39   : > { %p856_p8 = pnand %p855_p4, %p849_p5 }
  0x3b   : > { %859 = shalt.err (!%p856_p8)
}
  0x3c   : > { %s934_s9 = smov 128   ;;  %s935_s10 = smov 8  }
  0x3d   : > { %745 = dma.hbm_to_vmem [thread:$0]  (!%p1056_p11), %s1054_s29, 256, %s1060_s6, %s1062_s8, %s934_s9, %s934_s9, %s935_s10  }
  0x3e   : > { %p1208_p1 = scmp.ne.s32.totalorder %s1203_s26, 0 }
  0x3f   : > { %s1086_s11 = sand.u32 (!%p1208_p1), 1, %s920_s19   ;;  %p1209_p4 = scmp.ne.s32.totalorder (!%p1208_p1), %s1201_s24, 0 }
  0x40   : > { %221 = sbr.rel (%p1208_p1) target bundleno = 615 (0x267), region = 40  ;;  %s691_s12 = sshll.u32 (!%p1208_p1), %s1086_s11, 4 }
  0x41   : > { %s224_s16 = scalar_lea.sflag (!%p1208_p1), [#allocation3], %s1086_s11  ;;  %s1090_s17 = scalar_lea.vmem (!%p1208_p1), [#allocation2], %s691_s12 }
  0x45   : > { %903 = dma.done.wait (%p1209_p4), %s224_s16, 256  }
  0x46   : > { %905 = vsyncadd (%p1209_p4), %s224_s16, 4294967040  ;;  %p1210_p6 = scmp.eq.s32.totalorder %s991_s22, 0 }
  0x48   : > { %907 = dma.done.wait (%p1210_p6), [#allocation6], 1920   ;;  %p1211_p8 = pmov %p1210_p6 }
  0x49   : > { %v936_v0 = vmov 0.0   ;;  %vm301_vm0 = vcmask 1043456   ;;  %v275_v1 = vld [vmem:[#allocation5 + $0x68] sm:$0xf]  ;;  %v274_v2 = vld [vmem:[#allocation5 + $0x60] sm:$0xf]  ;;  %v279_v18 = vlaneseq }
  0x4a   : > { %909 = vsyncadd (%p1211_p8), [#allocation6], 4294965376  ;;  %375 = vmatprep.mubr.f32.mxu0 %v936_v0  ;;  %v272_v3 = vld [vmem:[#allocation5 + $0x50] sm:$0xff]  ;;  %693 = vmatprep.subr.msk.mxu0 %vm301_vm0, %v275_v1  ;;  %v271_v4 = vld [vmem:[#allocation5 + $0x48] sm:$0xff]  ;;  %vm294_vm1 = vcmask 293888   ;;  %s728_s29 = smul.u32 48, %s1086_s11 }
  0x4b   : > { %694 = vmatpush1.msk.msra.mxu0 %vm301_vm0, %v274_v2  ;;  %v269_v5 = vld [vmem:[#allocation5 + $0x38] sm:$0xff]  ;;  %v276_v6 = vld [vmem:[#allocation5 + $0x70] sm:$0xf]  ;;  %v266_v9 = vld [vmem:[#allocation5 + $0x20] sm:$0xff]  ;;  %v280_v19 = vshrl.u32 %v279_v18, 7  ;;  %s729_s27 = smul.u32 768, %s991_s22 }
  0x4c   : > { %335 = vmatprep.subr.mxu0 %v272_v3  ;;  %v268_v7 = vld [vmem:[#allocation5 + $0x30] sm:$0xff]  ;;  %715 = vmatprep.subr.msk.mxu1 %vm301_vm0, %v276_v6  ;;  %v273_v8 = vld [vmem:[#allocation5 + $0x58] sm:$0xff]  ;;  %v270_v10 = vld [vmem:[#allocation5 + $0x40] sm:$0xff]  ;;  %s257_s23 = scalar_lea.vmem [#allocation7], %s728_s29  ;;  %s586_s22 = scalar_lea.sflag [#allocation4], %s1086_s11 }
  0x4d   : > { %336 = vmatpush1.msra.mxu0 %v271_v4  ;;  %716 = vmatpush3.msk.msra.mxu1 %vm301_vm0, %v276_v6  ;;  %v265_v11 = vld [vmem:[#allocation5 + $0x18] sm:$0xff]  ;;  %v263_v12 = vld [vmem:[#allocation5 + $0x8] sm:$0xff]  ;;  %v262_v14 = vld [vmem:[#allocation5] sm:$0xff]  ;;  %v281_v20 = vsub.s32 0, %v280_v19  ;;  %v285_v22 = vsub.s32 1, %v280_v19  ;;  %v289_v25 = vsub.s32 2, %v280_v19  ;;  %s1146_s12 = scalar_lea.hbm %s1196_s5, %s729_s27 }
  0x4e   : > { %337 = vmatprep.subr.mxu0 %v269_v5  ;;  %717 = vmatprep.subr.mxu1 %v273_v8  ;;  %v267_v13 = vld [vmem:[#allocation5 + $0x28] sm:$0xff]  ;;  %v260_v15 = vld [vmem:[%s1090_s17] sm:$0xff]  ;;  %s600_s28 = sshll.u32 %s257_s23, 4  ;;  %p1212_p11 = scmp.ne.s32.totalorder %s1206_s14, 0  ;;  %s1148_s28 = int_to_ptr.vmem [resolvable:$true] %s600_s28 }
  0x4f   : > { %338 = vmatpush1.msra.mxu0 %v268_v7  ;;  %718 = vmatpush3.msra.mxu1 %v273_v8  ;;  %v264_v16 = vld [vmem:[#allocation5 + $0x10] sm:$0xff]  ;;  %v261_v17 = vld [vmem:[%s1090_s17 + $0x8] sm:$0xff]  ;;  %v277_v21 = vld [vmem:[%s1193_s2] sm:$0x7]  ;;  %s860_s16 = scalar_lea.vmem %s1148_s28, 768  ;;  %s937_s17 = smov [#allocation7]  }
  0x50   : > { %339 = vmatprep.subr.mxu0 %v266_v9  ;;  %719 = vmatprep.subr.mxu1 %v270_v10  ;;  %v282_v23 = vrot.slane %v277_v21, %v281_v20  ;;  %v286_v24 = vrot.slane %v277_v21, %v285_v22  ;;  %v290_v30 = vrot.slane %v277_v21, %v289_v25  ;;  %p861_p3 = scmp.ne.s32.totalorder %s1148_s28, %s860_s16  ;;  %s864_s24 = sshll.u32 %s937_s17, 4  ;;  %s865_s24 = int_to_ptr.vmem [resolvable:$false] %s864_s24 }
  0x51   : > { %340 = vmatpush1.msra.mxu0 %v265_v11  ;;  %720 = vmatpush3.msra.mxu1 %v270_v10  ;;  %s866_s26 = scalar_lea.vmem %s865_s24, 1536  ;;  %p867_p10 = scmp.lt.s32.totalorder %s1148_s28, %s865_s24 }
  0x52   : > { %341 = vmatprep.subr.mxu0 %v263_v12  ;;  %721 = vmatprep.subr.mxu1 %v267_v13  ;;  %p862_p7 = pnand %p861_p3, %p1212_p11  ;;  %p868_p2 = scmp.lt.s32.totalorder %s866_s26, %s860_s16 }
  0x53   : > { %342 = vmatpush1.msra.mxu0 %v262_v14  ;;  %722 = vmatpush3.msra.mxu1 %v267_v13 }
  0x54   : > { %695 = vmatmul.mubr.msk.f32.vlgmr.msra.gmra.mxu0 %vm294_vm1, %v260_v15  ;;  %723 = vmatprep.subr.mxu1 %v264_v16  ;;  %p863_p12 = pneg %p862_p7  ;;  %p869_p13 = por %p868_p2, %p867_p10 }
  0x55   : > { %381 = vmatprep.mubr.f32.mxu0 %v936_v0  ;;  %724 = vmatpush3.msra.mxu1 %v264_v16 }
  0x56   : > { %725 = vmatprep.mubr.msk.f32.mxu1 %vm294_vm1, %v260_v15  ;;  %p870_p0 = pnand %p869_p13, %p863_p12 }
  0x57   : > { %726 = vmatmul.mubr.msk.f32.vlgmr.msra.gmra.mxu1 %vm294_vm1, %v261_v17 }
  0x58   : > { %696 = vmatmul.mubr.msk.f32.gmra.mxu0 %vm294_vm1, %v261_v17 }
 0x114   : > { %v377_v26 = vpop.f32.mrf.mxu0 }
 0x115   : > { %v378_v27 = vadd.f32 %v377_v26, %v282_v23 }
 0x116   : > { %v379_v28 = vpop.f32.mrf.mxu0 }
 0x117   : > { %v380_v29 = vadd.f32 %v379_v28, %v286_v24  ;;  %465 = vadd.xlane.f32.xlu0 %v378_v27  ;;  %v727_v31 = vpop.f32.mrf.mxu1 }
 0x118   : > { %v383_v32 = vpop.f32.mrf.mxu0  ;;  %v460_v38 = vadd.f32 %v727_v31, %v290_v30 }
 0x119   : > { %v384_v33 = vadd.f32 %v383_v32, %v282_v23  ;;  %513 = vadd.xlane.f32.xlu1 %v380_v29  ;;  %v454_v34 = vpop.f32.mrf.mxu1 }
 0x11a   : > { %v385_v35 = vpop.f32.mrf.mxu0  ;;  %v455_v37 = vadd.f32 %v454_v34, %v290_v30 }
 0x11b   : > { %v386_v36 = vadd.f32 %v385_v35, %v286_v24  ;;  %467 = vadd.xlane.f32.xlu0 %v384_v33 }
 0x11d   : > { %515 = vadd.xlane.f32.xlu1 %v386_v36 }
 0x11f   : > { %549 = vadd.xlane.f32.xlu0 %v455_v37 }
 0x121   : > { %551 = vadd.xlane.f32.xlu1 %v460_v38 }
 0x1a0   : > { %v466_v39 = vpop.xlane.xlu0 %465 }
 0x1a1   : > { %v469_v40 = vmul.f32 0.03125, %v466_v39 }
 0x1a2   : > { %v514_v41 = vpop.xlane.xlu1 %513 }
 0x1a3   : > { %v1105_v42 = vsub.f32 %v378_v27, %v469_v40  ;;  %v517_v43 = vmul.f32 0.03125, %v514_v41  ;;  %v479_v63 = vmul.f32 %v469_v40, %v469_v40 }
 0x1a4   : > { %v468_v44 = vpop.xlane.xlu0 %467 }
 0x1a5   : > { %v1107_v45 = vsub.f32 %v380_v29, %v517_v43  ;;  %v470_v46 = vmul.f32 0.03125, %v468_v44  ;;  %v473_v47 = vmul.f32 %v1105_v42, %v1105_v42  ;;  %v527_v0 = vmul.f32 %v517_v43, %v517_v43  ;;  %v700_v43 = vld [vmem:[%s1194_s3] ss:$0 sm:$0xff] }
 0x1a6   : > { %v516_v48 = vpop.xlane.xlu1 %515  ;;  %v481_v2 = vmul.f32 96.0, %v479_v63 }
 0x1a7   : > { %v1111_v49 = vsub.f32 %v384_v33, %v470_v46  ;;  %v518_v50 = vmul.f32 0.03125, %v516_v48  ;;  %475 = vadd.xlane.f32.xlu0 %v473_v47  ;;  %v521_v54 = vmul.f32 %v1107_v45, %v1107_v45  ;;  %v480_v1 = vmul.f32 %v470_v46, %v470_v46  ;;  %v701_v46 = vld [vmem:[%s1195_s4] ss:$0 sm:$0xff] }
 0x1a8   : > { %v550_v51 = vpop.xlane.xlu0 %549  ;;  %v529_v8 = vmul.f32 96.0, %v527_v0 }
 0x1a9   : > { %v1113_v52 = vsub.f32 %v386_v36, %v518_v50  ;;  %v553_v53 = vmul.f32 0.03125, %v550_v51  ;;  %v474_v55 = vmul.f32 %v1111_v49, %v1111_v49  ;;  %v528_v5 = vmul.f32 %v518_v50, %v518_v50 }
 0x1aa   : > { %v552_v56 = vpop.xlane.xlu1 %551  ;;  %v482_v7 = vmul.f32 96.0, %v480_v1 }
 0x1ab   : > { %v1119_v57 = vsub.f32 %v455_v37, %v553_v53  ;;  %v554_v58 = vmul.f32 0.03125, %v552_v56  ;;  %523 = vadd.xlane.f32.xlu0 %v521_v54  ;;  %477 = vadd.xlane.f32.xlu1 %v474_v55  ;;  %v522_v60 = vmul.f32 %v1113_v52, %v1113_v52  ;;  %v563_v9 = vmul.f32 %v553_v53, %v553_v53 }
 0x1ac   : > { %v530_v15 = vmul.f32 96.0, %v528_v5 }
 0x1ad   : > { %v1121_v59 = vsub.f32 %v460_v38, %v554_v58  ;;  %v557_v61 = vmul.f32 %v1119_v57, %v1119_v57  ;;  %v564_v16 = vmul.f32 %v554_v58, %v554_v58  ;;  %v565_v21 = vmul.f32 96.0, %v563_v9 }
 0x1af   : > { %525 = vadd.xlane.f32.xlu1 %v522_v60  ;;  %559 = vadd.xlane.f32.xlu0 %v557_v61  ;;  %v558_v62 = vmul.f32 %v1121_v59, %v1121_v59  ;;  %v566_v30 = vmul.f32 96.0, %v564_v16 }
 0x1b3   : > { %561 = vadd.xlane.f32.xlu1 %v558_v62 }
 0x230   : > { %v476_v3 = vpop.xlane.xlu0 %475 }
 0x231   : > { %v483_v4 = vsub.f32 %v476_v3, %v481_v2 }
 0x233   : > { %v485_v6 = vmul.f32 0.03125, %v483_v4 }
 0x234   : > { %v478_v10 = vpop.xlane.xlu1 %477  ;;  %v524_v11 = vpop.xlane.xlu0 %523 }
 0x235   : > { %v487_v12 = vmax.f32 %v485_v6, 0.0  ;;  %v484_v13 = vsub.f32 %v478_v10, %v482_v7  ;;  %v531_v14 = vsub.f32 %v524_v11, %v529_v8 }
 0x237   : > { %v489_v17 = vadd.f32 1e-05, %v487_v12  ;;  %v486_v18 = vmul.f32 0.03125, %v484_v13  ;;  %v533_v19 = vmul.f32 0.03125, %v531_v14 }
 0x238   : > { %v526_v20 = vpop.xlane.xlu1 %525  ;;  %v560_v22 = vpop.xlane.xlu0 %559 }
 0x239   : > { %794 = vrsqrt.f32 %v489_v17  ;;  %v488_v23 = vmax.f32 %v486_v18, 0.0  ;;  %v535_v24 = vmax.f32 %v533_v19, 0.0  ;;  %v532_v25 = vsub.f32 %v526_v20, %v530_v15 }
 0x23a   : > { %v567_v26 = vsub.f32 %v560_v22, %v565_v21 }
 0x23b   : > { %v490_v27 = vadd.f32 1e-05, %v488_v23  ;;  %v537_v28 = vadd.f32 1e-05, %v535_v24  ;;  %v534_v29 = vmul.f32 0.03125, %v532_v25 }
 0x23c   : > { %v569_v31 = vmul.f32 0.03125, %v567_v26  ;;  %v562_v32 = vpop.xlane.xlu1 %561 }
 0x23d   : > { %796 = vrsqrt.f32 %v490_v27  ;;  %v536_v33 = vmax.f32 %v534_v29, 0.0  ;;  %v568_v34 = vsub.f32 %v562_v32, %v566_v30 }
 0x23e   : > { %798 = vrsqrt.f32 %v537_v28  ;;  %v571_v35 = vmax.f32 %v569_v31, 0.0 }
 0x23f   : > { %v538_v36 = vadd.f32 1e-05, %v536_v33  ;;  %v570_v37 = vmul.f32 0.03125, %v568_v34 }
 0x240   : > { %v573_v38 = vadd.f32 1e-05, %v571_v35 }
 0x241   : > { %800 = vrsqrt.f32 %v538_v36  ;;  %v572_v39 = vmax.f32 %v570_v37, 0.0 }
 0x242   : > { %802 = vrsqrt.f32 %v573_v38 }
 0x243   : > { %v574_v40 = vadd.f32 1e-05, %v572_v39 }
 0x245   : > { %804 = vrsqrt.f32 %v574_v40 }
 0x246   : > { %v795_v41 = vpop.eup %794 }
 0x247   : > { %v493_v44 = vmul.f32 %v795_v41, %v1105_v42 }
 0x249   : > { %v501_v47 = vmul.f32 %v700_v43, %v493_v44 }
 0x24a   : > { %v797_v48 = vpop.eup %796 }
 0x24b   : > { %v799_v50 = vpop.eup %798  ;;  %v509_v51 = vadd.f32 %v701_v46, %v501_v47  ;;  %v494_v53 = vmul.f32 %v797_v48, %v1111_v49 }
 0x24c   : > { %v541_v54 = vmul.f32 %v799_v50, %v1107_v45 }
 0x24d   : > { %511 = vst [vmem:[%s257_s23] sm:$0xff] %v509_v51  ;;  %v502_v55 = vmul.f32 %v700_v43, %v494_v53 }
 0x24e   : > { %v801_v56 = vpop.eup %800  ;;  %v543_v58 = vmul.f32 %v700_v43, %v541_v54 }
 0x24f   : > { %v803_v60 = vpop.eup %802  ;;  %v510_v42 = vadd.f32 %v701_v46, %v502_v55  ;;  %v542_v61 = vmul.f32 %v801_v56, %v1113_v52 }
 0x250   : > { %v545_v62 = vadd.f32 %v701_v46, %v543_v58  ;;  %v577_v63 = vmul.f32 %v803_v60, %v1119_v57 }
 0x251   : > { %512 = vst [vmem:[%s257_s23 + $0x18] sm:$0xff] %v510_v42  ;;  %v544_v0 = vmul.f32 %v700_v43, %v542_v61 }
 0x252   : > { %v805_v1 = vpop.eup %804  ;;  %547 = vst [vmem:[%s257_s23 + $0x8] sm:$0xff] %v545_v62  ;;  %v579_v49 = vmul.f32 %v700_v43, %v577_v63 }
 0x253   : > { %v546_v45 = vadd.f32 %v701_v46, %v544_v0  ;;  %v578_v2 = vmul.f32 %v805_v1, %v1121_v59 }
 0x254   : > { %v581_v3 = vadd.f32 %v701_v46, %v579_v49 }
 0x255   : > { %548 = vst [vmem:[%s257_s23 + $0x20] sm:$0xff] %v546_v45  ;;  %v580_v4 = vmul.f32 %v700_v43, %v578_v2 }
 0x256   : > { %583 = vst [vmem:[%s257_s23 + $0x10] sm:$0xff] %v581_v3 }
 0x257   : > { %v582_v52 = vadd.f32 %v701_v46, %v580_v4 }
 0x259   : > { %584 = vst [vmem:[%s257_s23 + $0x28] sm:$0xff] %v582_v52 }
 0x25a   : > { %873 = shalt.err (!%p870_p0)
}
 0x25b   : > { %s874_s29 = scalar_lea.hbm %s1146_s12, 768  ;;  %s878_s8 = scalar_lea.hbm %s1196_s5, 1536 }
 0x25c   : > { %p875_p5 = scmp.ne.s32.totalorder %s1146_s12, %s874_s29  ;;  %p879_p4 = scmp.lt.s32.totalorder %s1146_s12, %s1196_s5 }
 0x25d   : > { %p880_p6 = scmp.lt.s32.totalorder %s878_s8, %s874_s29 }
 0x25e   : > { %p876_p9 = pnand %p875_p5, %p1212_p11 }
 0x25f   : > { %p881_p8 = por %p880_p6, %p879_p4 }
 0x260   : > { %p877_p1 = pneg %p876_p9 }
 0x262   : > { %p882_p3 = pnand %p881_p8, %p877_p1 }
 0x264   : > { %885 = shalt.err (!%p882_p3)
}
 0x265   : > { %s938_s27 = smov 384   ;;  %s939_s9 = smov 24  }
 0x266   : > { %736 = dma.vmem_to_hbm [thread:$0]  (%p1212_p11), %s1148_s28, 768, %s1146_s12, %s586_s22, %s938_s27, %s938_s27, %s939_s9  }
 0x267 PF: > { %s615_s10 = sand.u32 1, %s916_s18   ;;  %p1213_p7 = scmp.ne.s32.totalorder %s1202_s25, 0 }
 0x268   : > { %p1214_p12 = scmp.ge.s32.totalorder %s928_s21, 2  ;;  %s616_s16 = scalar_lea.sflag [#allocation4], %s615_s10 }
 0x26a   : > { %p747_p10 = pnand %p1214_p12, %p1213_p7 }
 0x26c   : > { %p748_p2 = pneg %p747_p10 }
 0x26e   : > { %911 = dma.done.wait (%p748_p2), %s616_s16, 768  }
 0x26f   : > { %913 = vsyncadd (%p748_p2), %s616_s16, 4294966528  ;;  %p19_p13 = scmp.ge.s32.totalorder %s1024_s30, 4   ;;  %s1215_s18 = smov %s920_s19 }
 0x270   : > { %s1216_s19 = smov %s924_s20  ;;  %s1217_s20 = smov %s1041_s13 }
 0x271   : > { %s1218_s21 = smov %s1024_s30  ;;  %21 = sbr.rel (!%p19_p13) target bundleno = 6 (0x6), region = 89 }
 0x276   :  { %621 = vsyncpa [#allocation3], 1 }
 0x277   :  { %623 = vsyncpa [#allocation3 + $0x1], 1 }
 0x278   :  { %624 = vsyncpa [#allocation6], 1 }
 0x279   :  { %625 = vsyncpa [#allocation4], 1 }
 0x27a   :  { %627 = vsyncpa [#allocation4 + $0x1], 1 }

</bundles_post_ra>
